<compile_context>
chip_gen: v7x
topology: tpu7x:2x2x1
jax: 0.10.0
libtpu: 0.0.40
codegen_flags: <defaults>
</compile_context>

<pallas_src>
import jax
import jax.numpy as jnp
from jax.experimental import pallas as pl
from jax.experimental.pallas import tpu as pltpu


_SUBLANE = 8
_LANE = 128
_TILE_BYTES = 4 * 1024 * 1024   # in-tile + out-tile budget (x2 for double buffering)


def _residual_add_kernel(x_ref, o_ref):
    x = x_ref[...]
    # blocks(x) + residual  with  blocks = shortcut = nn.Identity().
    o_ref[...] = x + x


def _choose_row_tile(m, l, itemsize):
    """Largest row tile (multiple of 8, divisor of m) whose in+out tiles fit the
    VMEM budget.  Returns m (single full block) for small or oddly shaped inputs
    (a full-extent block is exempt from the (8,128) divisibility rule)."""
    total = m * l * itemsize
    if 2 * total <= _TILE_BYTES or (l % _LANE) or (m % _SUBLANE):
        return m
    tm = m
    while tm > _SUBLANE and ((m % tm) or 2 * tm * l * itemsize > _TILE_BYTES):
        tm -= _SUBLANE
    return tm if (m % tm == 0) else m


def residual_block_forward(x, in_channels=None, out_channels=None):
    """ResidualBlock.forward.  x: (N, C, H, W) NCHW float tensor.  Returns x + x.

    `in_channels`/`out_channels` only gate whether `shortcut` is applied in the
    reference; since shortcut = nn.Identity() the result is x + x either way.
    # TODO(synk): if the block ever grows a real projection shortcut (1x1 conv)
    # or conv/BN `blocks`, fold them into this same kernel as a fused
    # matmul + epilogue rather than separate pallas_calls.
    """
    n, c, h, w = x.shape
    m, l = n * c, h * w
    x2 = x.reshape(m, l)                       # contiguous view: no data movement
    tm = _choose_row_tile(m, l, x.dtype.itemsize)

    if tm == m:
        out = pl.pallas_call(
            _residual_add_kernel,
            out_shape=jax.ShapeDtypeStruct((m, l), x.dtype),
        )(x2)
    else:
        out = pl.pallas_call(
            _residual_add_kernel,
            out_shape=jax.ShapeDtypeStruct((m, l), x.dtype),
            grid=(m // tm,),
            in_specs=[pl.BlockSpec((tm, l), lambda i: (i, 0))],
            out_specs=pl.BlockSpec((tm, l), lambda i: (i, 0)),
            compiler_params=pltpu.CompilerParams(
                dimension_semantics=("parallel",)),
        )(x2)
    return out.reshape(n, c, h, w)


if __name__ == "__main__":
    key = jax.random.PRNGKey(0)
    # Shapes implied by the module: a small (batch, channels, H, W) feature map.
    x = jax.random.normal(key, (2, 4, 16, 16), dtype=jnp.float32)

    fwd = jax.jit(residual_block_forward)
    out = fwd(x)
    jax.block_until_ready(out)

    assert out.shape == x.shape, out.shape
    assert bool(jnp.all(jnp.isfinite(out)))
    assert bool(jnp.allclose(out, x + x)), "mismatch vs reference (x + x)"

    # Exercise the tiled ("parallel" grid) path once with a larger aligned input.
    xl = jax.random.normal(jax.random.PRNGKey(1), (8, 64, 32, 128), jnp.float32)
    outl = jax.block_until_ready(jax.jit(residual_block_forward)(xl))
    assert outl.shape == xl.shape
    assert bool(jnp.allclose(outl, xl + xl)), "mismatch vs reference (tiled path)"

    print("KERNEL_OK")
</pallas_src>

<mosaic_0001>
module attributes {stable_mosaic.version = 11 : i64} {
  func.func @_residual_add_kernel(%arg0: memref<8x256xf32, #tpu.memory_space<vmem>>, %arg1: memref<8x256xf32, #tpu.memory_space<vmem>>) attributes {dimension_semantics = [], scalar_prefetch = 0 : i64, scratch_operands = 0 : i64, tpu.core_type = #tpu.core_type<tc>} {
    %c0 = arith.constant 0 : index
    %c0_0 = arith.constant 0 : index
    %0 = vector.load %arg0[%c0, %c0_0] : memref<8x256xf32, #tpu.memory_space<vmem>>, vector<8x256xf32>
    %1 = arith.addf %0, %0 : vector<8x256xf32>
    %c0_1 = arith.constant 0 : index
    %c0_2 = arith.constant 0 : index
    %2 = vector.load %arg1[%c0_1, %c0_2] : memref<8x256xf32, #tpu.memory_space<vmem>>, vector<8x256xf32>
    tpu.vector_store %arg1[%c0_1, %c0_2], %1 {strides = array<i32>} : memref<8x256xf32, #tpu.memory_space<vmem>>, vector<8x256xf32>,
    return
  }
}

</mosaic_0001>

<bundles_post_ra>
// kernel: residual_block_forward.1
= control target key start
LH: loop header
LB: loop body
LE: loop exit
PB: predicated region body
PF: predicated region fallthrough
CT: control target
= control target key end

     0   :  { %s40_s0 = inlined_call_operand.vmem [shape: f32[8,256], index: 0, kind: input, shape index: {}]   ;;  %s41_s1 = inlined_call_operand.vmem [shape: f32[8,256], index: 1, kind: output, shape index: {}]  }
   0x1   :  { %v8_v0 = vld [vmem:[%s40_s0] sm:$0xff]  ;;  %v9_v1 = vld [vmem:[%s40_s0 + $0x8] sm:$0xff] }
   0x2   :  { %v10_v2 = vadd.f32 %v8_v0, %v8_v0  ;;  %v11_v3 = vadd.f32 %v9_v1, %v9_v1 }
   0x4   :  { %12 = vst [vmem:[%s41_s1] sm:$0xff] %v10_v2  ;;  %13 = vst [vmem:[%s41_s1 + $0x8] sm:$0xff] %v11_v3 }

</bundles_post_ra>
